<compile_context>
chip_gen: v6e
topology: v6e:2x2x1
jax: 0.10.0
libtpu: 0.0.40
codegen_flags: <defaults>
</compile_context>

<pallas_src>
import functools

import jax
import jax.numpy as jnp
from jax import lax
from jax.experimental import pallas as pl
from jax.experimental.pallas import tpu as pltpu

_LANE = 128
_SUBLANE = 8


def _freq_encoding_kernel(x_ref, o_ref, *, d, n_freqs, max_freq):
    # x_ref: (tm, d)    o_ref: (tm, d*K)   -- lane-dense output tile
    K = n_freqs
    dk = d * K
    # Scatter-by-frequency matrix built from iotas (no int div/mod needed):
    #   S[r, c] = (c - r*K + 1)/K*max_freq   if r*K <= c < (r+1)*K   else 0
    col = lax.broadcasted_iota(jnp.int32, (d, dk), 1)
    row = lax.broadcasted_iota(jnp.int32, (d, dk), 0)
    base = row * K
    in_band = (col >= base) & (col < base + K)
    k_plus_1 = (col - base + 1).astype(jnp.float32)
    s = jnp.where(in_band, k_plus_1 / float(K) * float(max_freq), 0.0)
    # out[m, r*K + k] = sum_r' x[m, r'] * S[r', r*K + k] = x[m, r] * freqs[k]
    o_ref[...] = jnp.dot(
        x_ref[...].astype(jnp.float32),
        s,
        preferred_element_type=jnp.float32,
        precision=lax.Precision.HIGHEST,
    ).astype(o_ref.dtype)


def _round_up(x, m):
    return -(-x // m) * m


def _vmem_capacity_bytes():
    """Per-TensorCore VMEM capacity; defensively clamped to 64 MiB so a per-chip
    (2-TC) report can never blow the per-core budget on v7x."""
    cap = 64 * 1024 * 1024
    try:
        info = pltpu.get_tpu_info()
        q = getattr(info, "vmem_capacity_bytes", None)
        if q:
            cap = int(q)
    except Exception:
        pass
    return min(cap, 64 * 1024 * 1024)


def _pick_tm(M, D, K, in_itemsize, out_itemsize, tile_budget_bytes, min_steps=4):
    """Row-tile size.  Uses lane-padded per-row footprints, caps tm at 2048 rows
    (roofline saturates by ~1-2K rows), and keeps the grid >= min_steps
    (>= 2 steps per TensorCore on 2-TC chips) when M is large enough."""
    in_row = _round_up(D, _LANE) * in_itemsize            # (tm, 16) f32 pads to 128 lanes
    out_row = _round_up(D * K, _LANE) * out_itemsize
    per_row = in_row + out_row
    tm = tile_budget_bytes // (2 * per_row)                # x2: double-buffered pipeline
    tm = max(_SUBLANE, (int(tm) // _SUBLANE) * _SUBLANE)
    tm = min(tm, 2048)                                     # perf cap (review): >= this buys <2%
    if M > _SUBLANE * min_steps:
        per_step = _round_up(-(-M // min_steps), _SUBLANE)
        tm = min(tm, max(_SUBLANE, per_step))
    return int(max(1, min(tm, M)))


@functools.partial(jax.jit, static_argnames=("n_freqs", "max_freq", "tm"))
def freq_encoding(x, n_freqs=64, max_freq=10, tm=None):
    """Pallas implementation of FreqEncoding.forward."""
    K = int(n_freqs)
    orig_ndim = x.ndim
    x3 = x[:, None, :] if x.ndim == 2 else x               # (B, C, D)
    B, C, D = x3.shape
    M = B * C
    xm = x3.reshape(M, D)                                   # metadata-only reshape

    # torch keeps the float32 freqs buffer and promotes; mirror that.
    out_dtype = jnp.promote_types(x.dtype, jnp.float32)
    in_item = jnp.dtype(x.dtype).itemsize
    out_item = jnp.dtype(out_dtype).itemsize

    vmem_cap = _vmem_capacity_bytes()
    if tm is None:
        tm = _pick_tm(M, D, K, in_item, out_item, vmem_cap // 2)
    tm = int(min(tm, M))

    grid = (pl.cdiv(M, tm),)

    # VMEM budget for the compiler: lane/sublane-padded, double-buffered tiles
    # plus headroom for compiler scratch / semaphores.
    tm_pad = _round_up(tm, _SUBLANE)
    in_block = tm_pad * _round_up(D, _LANE) * in_item
    out_block = tm_pad * _round_up(D * K, _LANE) * out_item
    needed = 2 * (in_block + out_block) + (4 << 20)
    vmem_limit = int(min(vmem_cap, max(16 << 20, needed)))

    cost = pl.CostEstimate(
        flops=2 * M * D * (D * K),
        transcendentals=0,
        bytes_accessed=M * D * in_item + M * D * K * out_item,
    )

    kernel = functools.partial(
        _freq_encoding_kernel, d=D, n_freqs=K, max_freq=max_freq)

    out = pl.pallas_call(
        kernel,
        out_shape=jax.ShapeDtypeStruct((M, D * K), out_dtype),
        grid_spec=pltpu.PrefetchScalarGridSpec(
            num_scalar_prefetch=0,
            grid=grid,
            # Input block last dim (= D) equals the full array dim, so the
            # (8,128) rule is satisfied; output last dim D*K is lane-dense.
            in_specs=[pl.BlockSpec((tm, D), lambda i: (i, 0))],
            out_specs=pl.BlockSpec((tm, D * K), lambda i: (i, 0)),
        ),
        compiler_params=pltpu.CompilerParams(
            dimension_semantics=("parallel",),
            vmem_limit_bytes=vmem_limit,
        ),
        cost_estimate=cost,
    )(xm)

    if orig_ndim == 2:
        return out.reshape(B, D * K)                         # metadata-only reshape
    return out.reshape(B, C, D * K)                          # metadata-only reshape


def _reference(x, n_freqs=64, max_freq=10):
    """Pure-JAX reference mirroring the torch forward (f32 freqs buffer + promotion)."""
    freqs = jnp.arange(1, n_freqs + 1, dtype=jnp.float32) / n_freqs * max_freq
    x3 = x[:, None, :] if x.ndim == 2 else x
    enc = jnp.einsum("bcd,k->bcdk", x3.astype(jnp.float32), freqs)
    out_dtype = jnp.promote_types(x.dtype, jnp.float32)
    return enc.reshape(*x.shape[:-1], -1).astype(out_dtype)


if __name__ == "__main__":
    key = jax.random.PRNGKey(0)
    k3, k2, kb = jax.random.split(key, 3)

    # 3-D input: (batch=2, channels=4, d=16), n_freqs=64 -> out (2, 4, 1024)
    x3 = jax.random.normal(k3, (2, 4, 16), dtype=jnp.float32)
    out3 = jax.block_until_ready(freq_encoding(x3, n_freqs=64, max_freq=10))
    assert out3.shape == (2, 4, 1024)
    assert jnp.allclose(out3, _reference(x3, 64, 10), atol=1e-5, rtol=1e-5)

    # 2-D input path: (batch=2, d=16) -> out (2, 1024)
    x2 = jax.random.normal(k2, (2, 16), dtype=jnp.float32)
    out2 = jax.block_until_ready(freq_encoding(x2, n_freqs=64, max_freq=10))
    assert out2.shape == (2, 1024)
    assert jnp.allclose(out2, _reference(x2, 64, 10), atol=1e-5, rtol=1e-5)

    # Multi-tile path (exercises tm selection and the >=2-steps-per-core grid):
    # (256, 4, 16) -> M = 1024 rows -> 4 grid steps of 256 rows each.
    xb = jax.random.normal(kb, (256, 4, 16), dtype=jnp.float32)
    outb = jax.block_until_ready(freq_encoding(xb, n_freqs=64, max_freq=10))
    assert outb.shape == (256, 4, 1024)
    assert jnp.allclose(outb, _reference(xb, 64, 10), atol=1e-5, rtol=1e-5)

    print("KERNEL_OK")
</pallas_src>

<mosaic_0001>
module attributes {stable_mosaic.version = 11 : i64} {
  func.func @_freq_encoding_kernel(%arg0: i32, %arg1: memref<8x16xf32, #tpu.memory_space<vmem>>, %arg2: memref<8x1024xf32, #tpu.memory_space<vmem>>) attributes {dimension_semantics = [#tpu.dimension_semantics<parallel>], iteration_bounds = array<i64: 1>, scalar_prefetch = 0 : i64, scratch_operands = 0 : i64, tpu.core_type = #tpu.core_type<tc>, window_params = [{transform_indices = @transform_0, window_bounds = array<i64: 8, 16>}, {transform_indices = @transform_1, window_bounds = array<i64: 8, 1024>}]} {
    %0 = tpu.iota {dimensions = array<i32: 1>} : vector<16x1024xi32>
    %1 = tpu.iota {dimensions = array<i32: 0>} : vector<16x1024xi32>
    %c64_i32 = arith.constant 64 : i32
    %2 = vector.broadcast %c64_i32 : i32 to vector<16x1024xi32>
    %3 = arith.muli %1, %2 : vector<16x1024xi32>
    %4 = arith.cmpi sge, %0, %3 : vector<16x1024xi32>
    %c64_i32_0 = arith.constant 64 : i32
    %5 = vector.broadcast %c64_i32_0 : i32 to vector<16x1024xi32>
    %6 = arith.addi %3, %5 : vector<16x1024xi32>
    %7 = arith.cmpi slt, %0, %6 : vector<16x1024xi32>
    %8 = arith.andi %4, %7 : vector<16x1024xi1>
    %9 = arith.subi %0, %3 : vector<16x1024xi32>
    %c1_i32 = arith.constant 1 : i32
    %10 = vector.broadcast %c1_i32 : i32 to vector<16x1024xi32>
    %11 = arith.addi %9, %10 : vector<16x1024xi32>
    %12 = arith.sitofp %11 : vector<16x1024xi32> to vector<16x1024xf32>
    %cst = arith.constant 6.400000e+01 : f32
    %13 = vector.broadcast %cst : f32 to vector<16x1024xf32>
    %14 = arith.divf %12, %13 : vector<16x1024xf32>
    %cst_1 = arith.constant 1.000000e+01 : f32
    %15 = vector.broadcast %cst_1 : f32 to vector<16x1024xf32>
    %16 = arith.mulf %14, %15 : vector<16x1024xf32>
    %cst_2 = arith.constant 0.000000e+00 : f32
    %17 = vector.broadcast %cst_2 : f32 to vector<16x1024xf32>
    %18 = arith.select %8, %16, %17 : vector<16x1024xi1>, vector<16x1024xf32>
    %c0 = arith.constant 0 : index
    %c0_3 = arith.constant 0 : index
    %19 = vector.load %arg1[%c0, %c0_3] : memref<8x16xf32, #tpu.memory_space<vmem>>, vector<8x16xf32>
    %cst_4 = arith.constant dense<0.000000e+00> : vector<8x1024xf32>
    %20 = tpu.matmul %19, %18, %cst_4 {dimension_numbers = #tpu.dot_dimension_numbers<[1], [0], [0], [1], [0, 0, 1, 1], [], []>, precision = #tpu.contract_precision<fp32>} : vector<8x16xf32>, vector<16x1024xf32>, vector<8x1024xf32> -> vector<8x1024xf32>
    %c0_5 = arith.constant 0 : index
    %c0_6 = arith.constant 0 : index
    %21 = vector.load %arg2[%c0_5, %c0_6] : memref<8x1024xf32, #tpu.memory_space<vmem>>, vector<8x1024xf32>
    tpu.vector_store %arg2[%c0_5, %c0_6], %20 {strides = array<i32>} : memref<8x1024xf32, #tpu.memory_space<vmem>>, vector<8x1024xf32>,
    return
  }
  func.func @transform_0(%arg0: i32) -> (i32, i32) {
    %c0_i32 = arith.constant 0 : i32
    %c0_i32_0 = arith.constant 0 : i32
    return %arg0, %c0_i32 : i32, i32
  }
  func.func @transform_1(%arg0: i32) -> (i32, i32) {
    %c0_i32 = arith.constant 0 : i32
    %c0_i32_0 = arith.constant 0 : i32
    return %arg0, %c0_i32 : i32, i32
  }
}

</mosaic_0001>

<bundles_post_ra>
// kernel: freq_encoding.1
= control target key start
LH: loop header
LB: loop body
LE: loop exit
PB: predicated region body
PF: predicated region fallthrough
CT: control target
= control target key end

     0   :  { %6 = vsyncpa [#allocation3], 0  ;;  %s2187_s6 = smov [#allocation2]   ;;  %s2745_s0 = inlined_call_operand.hbm [shape: f32[8,16], index: 0, kind: input, shape index: {}]   ;;  %s2746_s1 = inlined_call_operand.vmem [shape: f32[8,1024], index: 1, kind: output, shape index: {}]  }
   0x1   :  { %s13_s7 = sshll.u32 %s2187_s6, 4  ;;  %s14_s7 = int_to_ptr.vmem [resolvable:$true] %s13_s7 }
   0x2   :  { %s2173_s8 = scalar_lea.vmem %s14_s7, 128  ;;  %p2178_p1 = scmp.lt.s32.totalorder %s14_s7, %s14_s7 }
   0x3   :  { %p2174_p0 = scmp.ne.s32.totalorder %s14_s7, %s2173_s8  ;;  %p2179_p2 = scmp.lt.s32.totalorder %s2173_s8, %s2173_s8 }
   0x5   :  { %p2180_p3 = por %p2179_p2, %p2178_p1 }
   0x7   :  { %p2181_p4 = pnand %p2180_p3, %p2174_p0 }
   0x9   :  { %2184 = shalt.err (!%p2181_p4)
}
   0xa   :  { %16 = dma.hbm_to_vmem [thread:$0]  %s2745_s0, 128, %s14_s7, [#allocation3]  }
   0xb   :  { %2185 = dma.done.wait [#allocation3], 128  }
   0xc   :  { %2186 = vsyncadd [#allocation3], 4294967168  ;;  %v20_v0 = vlaneseq  ;;  %v2188_v1 = vmov 0.0   ;;  %vm182_vm0 = vcmask 130048   ;;  %v181_v16 = vld [vmem:[#allocation2] sm:$0xff] }
   0xd   :  { %254 = vmatprep.mubr.f32.mxu0 %v2188_v1  ;;  %350 = vmatprep.mubr.f32.mxu1 %v2188_v1  ;;  %v184_v24 = vsel %vm182_vm0, %v181_v16, 0 }
   0xe   :  { %v2204_v2 = vand.u32 127, %v20_v0  ;;  %v30_v3 = vshrl.u32 %v20_v0, 7  ;;  %v2247_v27 = vand.u32 4294901760, %v184_v24 }
  0x10   :  { %v22_v4 = vadd.s32 128, %v2204_v2  ;;  %v31_v5 = vadd.s32 8, %v30_v3  ;;  %v2207_v6 = vmul.u32 64, %v30_v3  ;;  %v2210_v7 = vadd.s32 384, %v2204_v2 }
  0x11   :  { %v2219_v11 = vadd.s32 256, %v2204_v2  ;;  %v2227_v13 = vadd.s32 640, %v2204_v2  ;;  %v2272_v35 = vsub.f32 %v184_v24, %v2247_v27  ;;  %v2371_v29 = vadd.s32 896, %v2204_v2 }
  0x12   :  { %v2212_v8 = vmul.u32 64, %v31_v5  ;;  %v2215_v9 = vadd.s32 64, %v2207_v6  ;;  %v85_v10 = vsub.s32 %v22_v4, %v2207_v6  ;;  %vm35_vm1 = vcmp.ge.s32.totalorder %v22_v4, %v2207_v6 }
  0x13   :  { %vm34_vm2 = vcmp.ge.s32.totalorder %v2204_v2, %v2207_v6  ;;  %v84_v12 = vsub.s32 %v2204_v2, %v2207_v6  ;;  %v87_v17 = vsub.s32 %v2210_v7, %v2207_v6  ;;  %vm37_vm15 = vcmp.ge.s32.totalorder %v2210_v7, %v2207_v6 }
  0x14   :  { %vm43_vm3 = vcmp.ge.s32.totalorder %v22_v4, %v2212_v8  ;;  %v2231_v14 = vadd.s32 64, %v2212_v8  ;;  %v93_v15 = vsub.s32 %v22_v4, %v2212_v8  ;;  %vm42_vm4 = vcmp.ge.s32.totalorder %v2204_v2, %v2212_v8 }
  0x15   :  { %v92_v18 = vsub.s32 %v2204_v2, %v2212_v8  ;;  %vm53_vm5 = vcmp.lt.s32.totalorder %v22_v4, %v2215_v9  ;;  %v101_v19 = vadd.s32 1, %v85_v10  ;;  %vm52_vm7 = vcmp.lt.s32.totalorder %v2204_v2, %v2215_v9 }
  0x16   :  { %vm61_vm6 = vcmp.lt.s32.totalorder %v22_v4, %v2231_v14  ;;  %v109_v20 = vadd.s32 1, %v93_v15  ;;  %v100_v21 = vadd.s32 1, %v84_v12  ;;  %vm60_vm8 = vcmp.lt.s32.totalorder %v2204_v2, %v2231_v14  ;;  %vm2255_vm10 = vmand %vm35_vm1, %vm53_vm5 }
  0x17   :  { %v108_v22 = vadd.s32 1, %v92_v18  ;;  %v117_v23 = vcvt.s32.f32 %v101_v19  ;;  %vm45_vm9 = vcmp.ge.s32.totalorder %v2210_v7, %v2212_v8  ;;  %vm63_vm11 = vcmp.lt.s32.totalorder %v2210_v7, %v2231_v14  ;;  %vm2267_vm12 = vmand %vm43_vm3, %vm61_vm6 }
  0x18   :  { %v125_v25 = vcvt.s32.f32 %v109_v20  ;;  %v116_v26 = vcvt.s32.f32 %v100_v21  ;;  %v95_v31 = vsub.s32 %v2210_v7, %v2212_v8  ;;  %vm44_vm13 = vcmp.ge.s32.totalorder %v2219_v11, %v2212_v8  ;;  %vm68_vm14 = vmand %vm34_vm2, %vm52_vm7 }
  0x19   :  { %v124_v28 = vcvt.s32.f32 %v108_v22  ;;  %v134_v30 = vmul.f32 0.015625, %v117_v23  ;;  %v94_v39 = vsub.s32 %v2219_v11, %v2212_v8  ;;  %vm76_vm0 = vmand %vm42_vm4, %vm60_vm8  ;;  %v2293_v42 = vand.u32 4294901760, %v2272_v35 }
  0x1a   :  { %v142_v33 = vmul.f32 0.015625, %v125_v25  ;;  %v133_v34 = vmul.f32 0.015625, %v116_v26  ;;  %v111_v38 = vadd.s32 1, %v95_v31  ;;  %vm62_vm1 = vcmp.lt.s32.totalorder %v2219_v11, %v2231_v14  ;;  %vm79_vm2 = vmand %vm45_vm9, %vm63_vm11 }
  0x1b   :  { %v141_v36 = vmul.f32 0.015625, %v124_v28  ;;  %v150_v37 = vmul.f32 10.0, %v134_v30  ;;  %v110_v46 = vadd.s32 1, %v94_v39  ;;  %v258_v50 = vsub.f32 %v2272_v35, %v2293_v42  ;;  %vm2340_vm4 = vmand %vm44_vm13, %vm62_vm1 }
  0x1c   :  { %v158_v40 = vmul.f32 10.0, %v142_v33  ;;  %v149_v41 = vmul.f32 10.0, %v133_v34  ;;  %v127_v45 = vcvt.s32.f32 %v111_v38  ;;  %v103_v62 = vadd.s32 1, %v87_v17 }
  0x1d   :  { %v157_v43 = vmul.f32 10.0, %v141_v36  ;;  %v166_v44 = vsel %vm2255_vm10, %v150_v37, 0.0  ;;  %v2311_v56 = vand.u32 4294901760, %v258_v50  ;;  %v126_v58 = vcvt.s32.f32 %v110_v46 }
  0x1e   :  { %v174_v47 = vsel %vm2267_vm12, %v158_v40, 0.0  ;;  %v2301_v48 = vand.u32 4294901760, %v166_v44  ;;  %v165_v49 = vsel %vm68_vm14, %v149_v41, 0.0  ;;  %v144_v54 = vmul.f32 0.015625, %v127_v45 }
  0x1f   :  { %v2305_v51 = vand.u32 4294901760, %v174_v47  ;;  %v173_v52 = vsel %vm76_vm0, %v157_v43, 0.0  ;;  %v2307_v53 = vand.u32 4294901760, %v165_v49  ;;  %v143_v3 = vmul.f32 0.015625, %v126_v58 }
  0x20   :  { %v2309_v55 = vand.u32 4294901760, %v173_v52  ;;  %v2314_v57 = vsub.f32 %v166_v44, %v2301_v48  ;;  %v160_v61 = vmul.f32 10.0, %v144_v54  ;;  %vm55_vm3 = vcmp.lt.s32.totalorder %v2210_v7, %v2215_v9 }
  0x21   :  { %215 = vmatprep.subr.mxu0 %v2305_v51  ;;  %v295_v59 = vsub.f32 %v174_v47, %v2305_v51  ;;  %v2325_v60 = vsub.f32 %v165_v49, %v2307_v53  ;;  %v119_v15 = vcvt.s32.f32 %v103_v62  ;;  %v159_v19 = vmul.f32 10.0, %v143_v3  ;;  %vm2364_vm5 = vmand %vm37_vm15, %vm55_vm3 }
  0x22   :  { %217 = vmatpush1.msra.mxu0 %v2309_v55  ;;  %v301_v63 = vsub.f32 %v173_v52, %v2309_v55  ;;  %v308_v0 = vand.u32 4294901760, %v2314_v57  ;;  %v176_v10 = vsel %vm79_vm2, %v160_v61, 0.0  ;;  %v2353_v23 = vadd.s32 512, %v2204_v2 }
  0x23   :  { %219 = vmatprep.subr.mxu0 %v2301_v48  ;;  %v296_v4 = vand.u32 4294901760, %v295_v59  ;;  %v314_v5 = vand.u32 4294901760, %v2325_v60  ;;  %v2346_v18 = vand.u32 4294901760, %v176_v10  ;;  %v136_v22 = vmul.f32 0.015625, %v119_v15 }
  0x24   :  { %221 = vmatpush1.msra.mxu0 %v2307_v53  ;;  %v302_v16 = vand.u32 4294901760, %v301_v63  ;;  %v309_v17 = vsub.f32 %v2314_v57, %v308_v0  ;;  %v175_v25 = vsel %vm2340_vm4, %v159_v19, 0.0  ;;  %v86_v28 = vsub.s32 %v2219_v11, %v2207_v6 }
  0x25   :  { %v297_v20 = vsub.f32 %v295_v59, %v296_v4  ;;  %260 = vmatmul.mubr.f32.vlgmr.msra.gmra.mxu0 %v2311_v56  ;;  %388 = vmatprep.subr.mxu0 %v295_v59  ;;  %v315_v21 = vsub.f32 %v2325_v60, %v314_v5  ;;  %v2374_v32 = vand.u32 4294901760, %v175_v25  ;;  %v152_v33 = vmul.f32 10.0, %v136_v22 }
  0x26   :  { %v303_v24 = vsub.f32 %v301_v63, %v302_v16  ;;  %391 = vmatpush1.msra.mxu0 %v301_v63  ;;  %430 = vmatprep.mubr.f32.mxu0 %v2188_v1  ;;  %v310_v31 = vand.u32 4294901760, %v309_v17  ;;  %v102_v7 = vadd.s32 1, %v86_v28  ;;  %v2378_v37 = vsub.f32 %v176_v10, %v2346_v18 }
  0x27   :  { %v298_v30 = vand.u32 4294901760, %v297_v20  ;;  %394 = vmatprep.subr.mxu0 %v2314_v57  ;;  %v316_v36 = vand.u32 4294901760, %v315_v21  ;;  %v2382_v38 = vsub.f32 %v175_v25, %v2374_v32  ;;  %v168_v39 = vsel %vm2364_vm5, %v152_v33, 0.0 }
  0x28   :  { %v304_v34 = vand.u32 4294901760, %v303_v24  ;;  %397 = vmatpush1.msra.mxu0 %v2325_v60  ;;  %vm36_vm6 = vcmp.ge.s32.totalorder %v2219_v11, %v2207_v6  ;;  %v97_v40 = vsub.s32 %v2227_v13, %v2212_v8  ;;  %v2390_v41 = vand.u32 4294901760, %v168_v39 }
  0x29   :  { %299 = vmatprep.subr.mxu1 %v298_v30  ;;  %433 = vmatmul.mubr.f32.vlgmr.msra.gmra.mxu0 %v2272_v35  ;;  %vm54_vm7 = vcmp.lt.s32.totalorder %v2219_v11, %v2215_v9  ;;  %v118_v43 = vcvt.s32.f32 %v102_v7  ;;  %v787_v44 = vand.u32 4294901760, %v2378_v37  ;;  %v793_v45 = vand.u32 4294901760, %v2382_v38 }
  0x2a   :  { %305 = vmatpush1.msra.mxu1 %v304_v34  ;;  %548 = vmatprep.subr.mxu0 %v296_v4  ;;  %vm47_vm8 = vcmp.ge.s32.totalorder %v2227_v13, %v2212_v8  ;;  %v113_v46 = vadd.s32 1, %v97_v40  ;;  %v96_v47 = vsub.s32 %v2353_v23, %v2212_v8  ;;  %v2406_v52 = vsub.f32 %v168_v39, %v2390_v41  ;;  %vm2418_vm10 = vmand %vm36_vm6, %vm54_vm7 }
  0x2b   :  { %311 = vmatprep.subr.mxu1 %v310_v31  ;;  %552 = vmatpush1.msra.mxu0 %v302_v16  ;;  %v135_v49 = vmul.f32 0.015625, %v118_v43  ;;  %v2403_v50 = vsub.f32 %v2378_v37, %v787_v44  ;;  %vm65_vm9 = vcmp.lt.s32.totalorder %v2227_v13, %v2231_v14  ;;  %vm46_vm11 = vcmp.ge.s32.totalorder %v2353_v23, %v2212_v8 }
  0x2c   :  { %317 = vmatpush1.msra.mxu1 %v316_v36  ;;  %556 = vmatprep.subr.mxu0 %v308_v0  ;;  %v129_v57 = vcvt.s32.f32 %v113_v46  ;;  %vm64_vm12 = vcmp.lt.s32.totalorder %v2353_v23, %v2231_v14  ;;  %v112_v58 = vadd.s32 1, %v96_v47  ;;  %v794_v11 = vsub.f32 %v2382_v38, %v793_v45  ;;  %vm2455_vm15 = vmand %vm47_vm8, %vm65_vm9 }
  0x2d   :  { %352 = vmatmul.mubr.f32.vlgmr.msra.gmra.mxu1 %v2247_v27  ;;  %468 = vmatprep.subr.mxu1 %v2305_v51  ;;  %v151_v59 = vmul.f32 10.0, %v135_v49  ;;  %v799_v61 = vand.u32 4294901760, %v2406_v52  ;;  %v89_v62 = vsub.s32 %v2227_v13, %v2207_v6  ;;  %vm39_vm13 = vcmp.ge.s32.totalorder %v2227_v13, %v2207_v6  ;;  %vm2473_vm0 = vmand %vm46_vm11, %vm64_vm12 }
  0x2e   :  { %470 = vmatpush1.msra.mxu1 %v2309_v55  ;;  %507 = vmatprep.mubr.f32.mxu1 %v2188_v1  ;;  %v146_v63 = vmul.f32 0.015625, %v129_v57  ;;  %v128_v0 = vcvt.s32.f32 %v112_v58  ;;  %vm57_vm14 = vcmp.lt.s32.totalorder %v2227_v13, %v2215_v9  ;;  %v789_v4 = vand.u32 4294901760, %v2403_v50 }
  0x2f   :  { %472 = vmatprep.subr.mxu1 %v2301_v48  ;;  %560 = vmatpush1.msra.mxu0 %v314_v5  ;;  %v167_v3 = vsel %vm2418_vm10, %v151_v59, 0.0  ;;  %v800_v60 = vsub.f32 %v2406_v52, %v799_v61  ;;  %v105_v10 = vadd.s32 1, %v89_v62  ;;  %v88_v17 = vsub.s32 %v2353_v23, %v2207_v6  ;;  %vm73_vm3 = vmand %vm39_vm13, %vm57_vm14 }
  0x30   :  { %474 = vmatpush1.msra.mxu1 %v2307_v53  ;;  %593 = vmatprep.mubr.f32.mxu0 %v2188_v1  ;;  %v2461_v12 = vand.u32 4294901760, %v167_v3  ;;  %v162_v15 = vmul.f32 10.0, %v146_v63  ;;  %v145_v16 = vmul.f32 0.015625, %v128_v0  ;;  %v795_v19 = vand.u32 4294901760, %v794_v11 }
  0x31   :  { %511 = vmatmul.mubr.f32.vlgmr.msra.gmra.mxu1 %v2293_v42  ;;  %630 = vmatprep.subr.mxu1 %v2305_v51  ;;  %v121_v20 = vcvt.s32.f32 %v105_v10  ;;  %vm38_vm1 = vcmp.ge.s32.totalorder %v2353_v23, %v2207_v6  ;;  %vm56_vm2 = vcmp.lt.s32.totalorder %v2353_v23, %v2215_v9  ;;  %v104_v24 = vadd.s32 1, %v88_v17 }
  0x32   :  { %595 = vmatmul.mubr.f32.vlgmr.msra.gmra.mxu0 %v2247_v27  ;;  %632 = vmatpush1.msra.mxu1 %v2309_v55  ;;  %v2484_v55 = vsub.f32 %v167_v3, %v2461_v12  ;;  %v178_v21 = vsel %vm2455_vm15, %v162_v15, 0.0  ;;  %v161_v22 = vmul.f32 10.0, %v145_v16  ;;  %v801_v25 = vand.u32 4294901760, %v800_v60  ;;  %vm72_vm4 = vmand %vm38_vm1, %vm56_vm2 }
  0x33   :  { %706 = vmatprep.subr.mxu0 %v2346_v18  ;;  %634 = vmatprep.subr.mxu1 %v2301_v48  ;;  %v2490_v26 = vand.u32 4294901760, %v178_v21  ;;  %v138_v28 = vmul.f32 0.015625, %v121_v20  ;;  %v99_v30 = vsub.s32 %v2371_v29, %v2212_v8  ;;  %v2506_v33 = vadd.s32 768, %v2204_v2 }
  0x34   :  { %708 = vmatpush1.msra.mxu0 %v2374_v32  ;;  %636 = vmatpush1.msra.mxu1 %v2307_v53  ;;  %v805_v48 = vand.u32 4294901760, %v2484_v55  ;;  %v177_v31 = vsel %vm2473_vm0, %v161_v22, 0.0  ;;  %v120_v53 = vcvt.s32.f32 %v104_v24  ;;  %v91_v59 = vsub.s32 %v2371_v29, %v2207_v6 }
  0x35   :  { %669 = vmatprep.mubr.f32.mxu1 %v2188_v1  ;;  %710 = vmatprep.subr.mxu0 %v2390_v41  ;;  %v2510_v34 = vand.u32 4294901760, %v177_v31  ;;  %v154_v36 = vmul.f32 10.0, %v138_v28  ;;  %v115_v7 = vadd.s32 1, %v99_v30  ;;  %v2524_v40 = vsub.f32 %v178_v21, %v2490_v26 }
  0x36   :  { %671 = vmatmul.mubr.f32.vlgmr.msra.gmra.mxu1 %v2247_v27  ;;  %712 = vmatpush1.msra.mxu0 %v2461_v12  ;;  %v806_v13 = vsub.f32 %v2484_v55, %v805_v48  ;;  %v137_v39 = vmul.f32 0.015625, %v120_v53  ;;  %v98_v50 = vsub.s32 %v2506_v33, %v2212_v8  ;;  %vm49_vm5 = vcmp.ge.s32.totalorder %v2371_v29, %v2212_v8 }
  0x37   :  { %745 = vmatprep.mubr.f32.mxu0 %v2188_v1  ;;  %790 = vmatprep.subr.mxu1 %v789_v4  ;;  %v170_v2 = vsel %vm73_vm3, %v154_v36, 0.0  ;;  %v131_v43 = vcvt.s32.f32 %v115_v7  ;;  %v2534_v23 = vsub.f32 %v177_v31, %v2510_v34  ;;  %v1278_v63 = vand.u32 4294901760, %v2524_v40 }
  0x38   :  { %751 = vmatmul.mubr.f32.vlgmr.msra.gmra.mxu0 %v2311_v56  ;;  %796 = vmatpush1.msra.mxu1 %v795_v19  ;;  %v807_v46 = vand.u32 4294901760, %v806_v13  ;;  %v2527_v47 = vand.u32 4294901760, %v170_v2  ;;  %v153_v49 = vmul.f32 10.0, %v137_v39  ;;  %v114_v58 = vadd.s32 1, %v98_v50 }
  0x39   :  { %879 = vmatprep.subr.mxu0 %v2378_v37  ;;  %802 = vmatprep.subr.mxu1 %v801_v25  ;;  %v148_v62 = vmul.f32 0.015625, %v131_v43  ;;  %vm67_vm6 = vcmp.lt.s32.totalorder %v2371_v29, %v2231_v14  ;;  %v107_v3 = vadd.s32 1, %v91_v59  ;;  %v1284_v60 = vand.u32 4294901760, %v2534_v23 }
  0x3a   :  { %882 = vmatpush1.msra.mxu0 %v2382_v38  ;;  %841 = vmatprep.mubr.f32.mxu1 %v2188_v1  ;;  %v169_v54 = vsel %vm72_vm4, %v153_v49, 0.0  ;;  %v2538_v57 = vsub.f32 %v170_v2, %v2527_v47  ;;  %v130_v0 = vcvt.s32.f32 %v114_v58  ;;  %vm48_vm7 = vcmp.ge.s32.totalorder %v2506_v33, %v2212_v8  ;;  %vm2589_vm11 = vmand %vm49_vm5, %vm67_vm6 }
  0x3b   :  { %808 = vmatpush1.msra.mxu1 %v807_v46  ;;  %885 = vmatprep.subr.mxu0 %v2406_v52  ;;  %v2544_v11 = vand.u32 4294901760, %v169_v54  ;;  %vm41_vm8 = vcmp.ge.s32.totalorder %v2371_v29, %v2207_v6  ;;  %vm66_vm9 = vcmp.lt.s32.totalorder %v2506_v33, %v2231_v14  ;;  %v123_v15 = vcvt.s32.f32 %v107_v3 }
  0x3c   :  { %843 = vmatmul.mubr.f32.vlgmr.msra.gmra.mxu1 %v2247_v27  ;;  %888 = vmatpush1.msra.mxu0 %v2484_v55  ;;  %v1290_v5 = vand.u32 4294901760, %v2538_v57  ;;  %v147_v10 = vmul.f32 0.015625, %v130_v0  ;;  %v164_v17 = vmul.f32 10.0, %v148_v62  ;;  %vm59_vm10 = vcmp.lt.s32.totalorder %v2371_v29, %v2215_v9  ;;  %vm2605_vm12 = vmand %vm48_vm7, %vm66_vm9 }
  0x3d   :  { %921 = vmatprep.mubr.f32.mxu0 %v2188_v1  ;;  %959 = vmatprep.subr.mxu1 %v2346_v18  ;;  %v2556_v4 = vsub.f32 %v169_v54, %v2544_v11  ;;  %v90_v37 = vsub.s32 %v2506_v33, %v2207_v6  ;;  %v1279_v38 = vsub.f32 %v2524_v40, %v1278_v63  ;;  %v140_v19 = vmul.f32 0.015625, %v123_v15  ;;  %vm2620_vm13 = vmand %vm41_vm8, %vm59_vm10 }
  0x3e   :  { %924 = vmatmul.mubr.f32.vlgmr.msra.gmra.mxu0 %v2272_v35  ;;  %961 = vmatpush1.msra.mxu1 %v2374_v32  ;;  %v1285_v52 = vsub.f32 %v2534_v23, %v1284_v60  ;;  %v1291_v20 = vsub.f32 %v2538_v57, %v1290_v5  ;;  %vm40_vm14 = vcmp.ge.s32.totalorder %v2506_v33, %v2207_v6  ;;  %v180_v55 = vsel %vm2589_vm11, %v164_v17, 0.0 }
  0x3f   :  { %1039 = vmatprep.subr.mxu0 %v787_v44  ;;  %963 = vmatprep.subr.mxu1 %v2390_v41  ;;  %v1296_v16 = vand.u32 4294901760, %v2556_v4  ;;  %v106_v51 = vadd.s32 1, %v90_v37  ;;  %v156_v14 = vmul.f32 10.0, %v140_v19  ;;  %vm58_vm15 = vcmp.lt.s32.totalorder %v2506_v33, %v2215_v9 }
  0x40   :  { %1043 = vmatpush1.msra.mxu0 %v793_v45  ;;  %965 = vmatpush1.msra.mxu1 %v2461_v12  ;;  %v163_v45 = vmul.f32 10.0, %v147_v10  ;;  %v1280_v21 = vand.u32 4294901760, %v1279_v38  ;;  %v1292_v28 = vand.u32 4294901760, %v1291_v20  ;;  %v2645_v30 = vand.u32 4294901760, %v180_v55  ;;  %vm74_vm0 = vmand %vm40_vm14, %vm58_vm15 }
  0x41   :  { %998 = vmatprep.mubr.f32.mxu1 %v2188_v1  ;;  %1047 = vmatprep.subr.mxu0 %v799_v61  ;;  %v122_v29 = vcvt.s32.f32 %v106_v51  ;;  %v172_v24 = vsel %vm2620_vm13, %v156_v14, 0.0 }
  0x42   :  { %1002 = vmatmul.mubr.f32.vlgmr.msra.gmra.mxu1 %v2293_v42  ;;  %1051 = vmatpush1.msra.mxu0 %v805_v48  ;;  %v179_v22 = vsel %vm2605_vm12, %v163_v45, 0.0  ;;  %v2658_v31 = vand.u32 4294901760, %v172_v24  ;;  %v1768_v53 = vsub.f32 %v180_v55, %v2645_v30 }
  0x43   :  { %1084 = vmatprep.mubr.f32.mxu0 %v2188_v1  ;;  %1121 = vmatprep.subr.mxu1 %v2346_v18  ;;  %v1297_v18 = vsub.f32 %v2556_v4, %v1296_v16  ;;  %v139_v25 = vmul.f32 0.015625, %v122_v29 }
  0x44   :  { %1086 = vmatmul.mubr.f32.vlgmr.msra.gmra.mxu0 %v2247_v27  ;;  %1123 = vmatpush1.msra.mxu1 %v2374_v32  ;;  %v1286_v32 = vand.u32 4294901760, %v1285_v52  ;;  %v1780_v36 = vsub.f32 %v172_v24, %v2658_v31  ;;  %v1769_v13 = vand.u32 4294901760, %v1768_v53 }
  0x45   :  { %1197 = vmatprep.subr.mxu0 %v2490_v26  ;;  %1125 = vmatprep.subr.mxu1 %v2390_v41  ;;  %v1298_v41 = vand.u32 4294901760, %v1297_v18  ;;  %v155_v48 = vmul.f32 10.0, %v139_v25 }
  0x46   :  { %1199 = vmatpush1.msra.mxu0 %v2510_v34  ;;  %1127 = vmatpush1.msra.mxu1 %v2461_v12  ;;  %v2655_v12 = vand.u32 4294901760, %v179_v22  ;;  %v1781_v2 = vand.u32 4294901760, %v1780_v36  ;;  %v1770_v46 = vsub.f32 %v1768_v53, %v1769_v13 }
  0x47   :  { %1160 = vmatprep.mubr.f32.mxu1 %v2188_v1  ;;  %1201 = vmatprep.subr.mxu0 %v2527_v47  ;;  %v171_v9 = vsel %vm74_vm0, %v155_v48, 0.0 }
  0x48   :  { %1162 = vmatmul.mubr.f32.vlgmr.msra.gmra.mxu1 %v2247_v27  ;;  %1203 = vmatpush1.msra.mxu0 %v2544_v11  ;;  %v2662_v6 = vand.u32 4294901760, %v171_v9  ;;  %v1774_v33 = vsub.f32 %v179_v22, %v2655_v12  ;;  %v1782_v49 = vsub.f32 %v1780_v36, %v1781_v2 }
  0x49   :  { %1236 = vmatprep.mubr.f32.mxu0 %v2188_v1  ;;  %1281 = vmatprep.subr.mxu1 %v1280_v21 }
  0x4a   :  { %1242 = vmatmul.mubr.f32.vlgmr.msra.gmra.mxu0 %v2311_v56  ;;  %1287 = vmatpush1.msra.mxu1 %v1286_v32  ;;  %v1786_v7 = vsub.f32 %v171_v9, %v2662_v6  ;;  %v1775_v39 = vand.u32 4294901760, %v1774_v33 }
  0x4b   :  { %1370 = vmatprep.subr.mxu0 %v2524_v40  ;;  %1293 = vmatprep.subr.mxu1 %v1292_v28 }
  0x4c   :  { %1373 = vmatpush1.msra.mxu0 %v2534_v23  ;;  %1299 = vmatpush1.msra.mxu1 %v1298_v41  ;;  %v1787_v43 = vand.u32 4294901760, %v1786_v7  ;;  %v1776_v40 = vsub.f32 %v1774_v33, %v1775_v39  ;;  %v1771_v23 = vand.u32 4294901760, %v1770_v46 }
  0x4d   :  { %1332 = vmatprep.mubr.f32.mxu1 %v2188_v1  ;;  %1376 = vmatprep.subr.mxu0 %v2538_v57 }
  0x4e   :  { %1334 = vmatmul.mubr.f32.vlgmr.msra.gmra.mxu1 %v2247_v27  ;;  %1379 = vmatpush1.msra.mxu0 %v2556_v4  ;;  %v1788_v50 = vsub.f32 %v1786_v7, %v1787_v43  ;;  %v1777_v54 = vand.u32 4294901760, %v1776_v40 }
  0x4f   :  { %1412 = vmatprep.mubr.f32.mxu0 %v2188_v1  ;;  %1450 = vmatprep.subr.mxu1 %v2490_v26 }
  0x50   :  { %1415 = vmatmul.mubr.f32.vlgmr.msra.gmra.mxu0 %v2272_v35  ;;  %1452 = vmatpush1.msra.mxu1 %v2510_v34 }
  0x51   :  { %1530 = vmatprep.subr.mxu0 %v1278_v63  ;;  %1454 = vmatprep.subr.mxu1 %v2527_v47 }
  0x52   :  { %1534 = vmatpush1.msra.mxu0 %v1284_v60  ;;  %1456 = vmatpush1.msra.mxu1 %v2544_v11 }
  0x53   :  { %1489 = vmatprep.mubr.f32.mxu1 %v2188_v1  ;;  %1538 = vmatprep.subr.mxu0 %v1290_v5 }
  0x54   :  { %1493 = vmatmul.mubr.f32.vlgmr.msra.gmra.mxu1 %v2293_v42  ;;  %1542 = vmatpush1.msra.mxu0 %v1296_v16 }
  0x55   :  { %1575 = vmatprep.mubr.f32.mxu0 %v2188_v1  ;;  %1612 = vmatprep.subr.mxu1 %v2490_v26  ;;  %v1783_v26 = vand.u32 4294901760, %v1782_v49 }
  0x56   :  { %1577 = vmatmul.mubr.f32.vlgmr.msra.gmra.mxu0 %v2247_v27  ;;  %1614 = vmatpush1.msra.mxu1 %v2510_v34  ;;  %v1789_v34 = vand.u32 4294901760, %v1788_v50 }
  0x57   :  { %1688 = vmatprep.subr.mxu0 %v2645_v30  ;;  %1616 = vmatprep.subr.mxu1 %v2527_v47 }
  0x58   :  { %1690 = vmatpush1.msra.mxu0 %v2655_v12  ;;  %1618 = vmatpush1.msra.mxu1 %v2544_v11 }
  0x59   :  { %1651 = vmatprep.mubr.f32.mxu1 %v2188_v1  ;;  %1692 = vmatprep.subr.mxu0 %v2658_v31 }
  0x5a   :  { %1653 = vmatmul.mubr.f32.vlgmr.msra.gmra.mxu1 %v2247_v27  ;;  %1694 = vmatpush1.msra.mxu0 %v2662_v6 }
  0x5b   :  { %1727 = vmatprep.mubr.f32.mxu0 %v2188_v1  ;;  %1772 = vmatprep.subr.mxu1 %v1771_v23 }
  0x5c   :  { %1733 = vmatmul.mubr.f32.vlgmr.msra.gmra.mxu0 %v2311_v56  ;;  %1778 = vmatpush1.msra.mxu1 %v1777_v54 }
  0x5d   :  { %1861 = vmatprep.subr.mxu0 %v1768_v53  ;;  %1784 = vmatprep.subr.mxu1 %v1783_v26 }
  0x5e   :  { %1864 = vmatpush1.msra.mxu0 %v1774_v33  ;;  %1790 = vmatpush1.msra.mxu1 %v1789_v34 }
  0x5f   :  { %1823 = vmatprep.mubr.f32.mxu1 %v2188_v1  ;;  %1867 = vmatprep.subr.mxu0 %v1780_v36 }
  0x60   :  { %1825 = vmatmul.mubr.f32.vlgmr.msra.gmra.mxu1 %v2247_v27  ;;  %1870 = vmatpush1.msra.mxu0 %v1786_v7 }
  0x61   :  { %1903 = vmatprep.mubr.f32.mxu0 %v2188_v1  ;;  %1941 = vmatprep.subr.mxu1 %v2645_v30 }
  0x62   :  { %1906 = vmatmul.mubr.f32.vlgmr.msra.gmra.mxu0 %v2272_v35  ;;  %1943 = vmatpush1.msra.mxu1 %v2655_v12 }
  0x63   :  { %2021 = vmatprep.subr.mxu0 %v1769_v13  ;;  %1945 = vmatprep.subr.mxu1 %v2658_v31 }
  0x64   :  { %2025 = vmatpush1.msra.mxu0 %v1775_v39  ;;  %1947 = vmatpush1.msra.mxu1 %v2662_v6 }
  0x65   :  { %1980 = vmatprep.mubr.f32.mxu1 %v2188_v1  ;;  %2029 = vmatprep.subr.mxu0 %v1781_v2 }
  0x66   :  { %1984 = vmatmul.mubr.f32.vlgmr.msra.gmra.mxu1 %v2293_v42  ;;  %2033 = vmatpush1.msra.mxu0 %v1787_v43 }
  0x67   :  { %2066 = vmatprep.mubr.f32.mxu0 %v2188_v1  ;;  %2103 = vmatprep.subr.mxu1 %v2645_v30 }
  0x68   :  { %2068 = vmatmul.mubr.f32.vlgmr.msra.gmra.mxu0 %v2247_v27  ;;  %2105 = vmatpush1.msra.mxu1 %v2655_v12 }
  0x69   :  { %2107 = vmatprep.subr.mxu1 %v2658_v31  ;;  %2142 = vmatprep.mubr.f32.mxu1 %v2188_v1 }
  0x6a   :  { %2109 = vmatpush1.msra.mxu1 %v2662_v6 }
  0x6b   :  { %2144 = vmatmul.mubr.f32.vlgmr.msra.gmra.mxu1 %v2247_v27 }
  0xe5   :  { %v261_v35 = vpop.f32.mrf.mxu0 }
  0xe7   :  { %v263_v56 = vpop.f32.mrf.mxu0 }
  0xe9   :  { %v434_v42 = vpop.f32.mrf.mxu0 }
  0xeb   :  { %v436_v58 = vpop.f32.mrf.mxu0 }
  0xed   :  { %v353_v47 = vpop.f32.mrf.mxu1 }
  0xee   :  { %v354_v57 = vadd.f32 %v353_v47, %v261_v35 }
  0xef   :  { %v355_v59 = vpop.f32.mrf.mxu1 }
  0xf0   :  { %v435_v11 = vadd.f32 %v434_v42, %v354_v57  ;;  %v356_v62 = vadd.f32 %v355_v59, %v263_v56 }
  0xf1   :  { %v512_v63 = vpop.f32.mrf.mxu1 }
  0xf2   :  { %v437_v0 = vadd.f32 %v436_v58, %v356_v62  ;;  %v513_v3 = vadd.f32 %v512_v63, %v435_v11  ;;  %v596_v4 = vpop.f32.mrf.mxu0 }
  0xf3   :  { %v514_v60 = vpop.f32.mrf.mxu1 }
  0xf4   :  { %v597_v5 = vadd.f32 %v596_v4, %v513_v3  ;;  %v515_v1 = vadd.f32 %v514_v60, %v437_v0  ;;  %v598_v10 = vpop.f32.mrf.mxu0 }
  0xf6   :  { %v599_v15 = vadd.f32 %v598_v10, %v515_v1  ;;  %v672_v16 = vpop.f32.mrf.mxu1 }
  0xf7   :  { %v673_v27 = vadd.f32 %v672_v16, %v597_v5 }
  0xf8   :  { %v752_v17 = vpop.f32.mrf.mxu0  ;;  %v674_v37 = vpop.f32.mrf.mxu1 }
  0xf9   :  { %2150 = vst [vmem:[%s2746_s1] sm:$0xff] %v673_v27  ;;  %v675_v38 = vadd.f32 %v674_v37, %v599_v15 }
  0xfa   :  { %v754_v44 = vpop.f32.mrf.mxu0 }
  0xfb   :  { %2151 = vst [vmem:[%s2746_s1 + $0x8] sm:$0xff] %v675_v38 }
  0xfc   :  { %v844_v45 = vpop.f32.mrf.mxu1 }
  0xfd   :  { %v845_v19 = vadd.f32 %v844_v45, %v752_v17 }
  0xfe   :  { %v925_v52 = vpop.f32.mrf.mxu0  ;;  %v846_v61 = vpop.f32.mrf.mxu1 }
  0xff   :  { %v926_v51 = vadd.f32 %v925_v52, %v845_v19  ;;  %v847_v20 = vadd.f32 %v846_v61, %v754_v44 }
 0x100   :  { %v927_v8 = vpop.f32.mrf.mxu0 }
 0x101   :  { %v928_v14 = vadd.f32 %v927_v8, %v847_v20 }
 0x102   :  { %v1003_v18 = vpop.f32.mrf.mxu1 }
 0x103   :  { %v1004_v55 = vadd.f32 %v1003_v18, %v926_v51 }
 0x104   :  { %v1087_v29 = vpop.f32.mrf.mxu0  ;;  %v1005_v21 = vpop.f32.mrf.mxu1 }
 0x105   :  { %v1088_v22 = vadd.f32 %v1087_v29, %v1004_v55  ;;  %v1006_v32 = vadd.f32 %v1005_v21, %v928_v14 }
 0x106   :  { %v1089_v24 = vpop.f32.mrf.mxu0 }
 0x107   :  { %v1090_v25 = vadd.f32 %v1089_v24, %v1006_v32 }
 0x108   :  { %v1163_v28 = vpop.f32.mrf.mxu1 }
 0x109   :  { %v1164_v30 = vadd.f32 %v1163_v28, %v1088_v22 }
 0x10a   :  { %v1243_v41 = vpop.f32.mrf.mxu0  ;;  %v1165_v12 = vpop.f32.mrf.mxu1 }
 0x10b   :  { %2152 = vst [vmem:[%s2746_s1 + $0x10] sm:$0xff] %v1164_v30  ;;  %v1166_v48 = vadd.f32 %v1165_v12, %v1090_v25 }
 0x10c   :  { %v1245_v31 = vpop.f32.mrf.mxu0 }
 0x10d   :  { %2153 = vst [vmem:[%s2746_s1 + $0x18] sm:$0xff] %v1166_v48 }
 0x10e   :  { %v1335_v9 = vpop.f32.mrf.mxu1 }
 0x10f   :  { %v1336_v6 = vadd.f32 %v1335_v9, %v1243_v41 }
 0x110   :  { %v1416_v53 = vpop.f32.mrf.mxu0  ;;  %v1337_v33 = vpop.f32.mrf.mxu1 }
 0x111   :  { %v1417_v36 = vadd.f32 %v1416_v53, %v1336_v6  ;;  %v1338_v7 = vadd.f32 %v1337_v33, %v1245_v31 }
 0x112   :  { %v1418_v13 = vpop.f32.mrf.mxu0 }
 0x113   :  { %v1419_v39 = vadd.f32 %v1418_v13, %v1338_v7 }
 0x114   :  { %v1494_v2 = vpop.f32.mrf.mxu1 }
 0x115   :  { %v1495_v43 = vadd.f32 %v1494_v2, %v1417_v36 }
 0x116   :  { %v1578_v46 = vpop.f32.mrf.mxu0  ;;  %v1496_v40 = vpop.f32.mrf.mxu1 }
 0x117   :  { %v1579_v49 = vadd.f32 %v1578_v46, %v1495_v43  ;;  %v1497_v50 = vadd.f32 %v1496_v40, %v1419_v39 }
 0x118   :  { %v1580_v23 = vpop.f32.mrf.mxu0 }
 0x119   :  { %v1581_v54 = vadd.f32 %v1580_v23, %v1497_v50 }
 0x11a   :  { %v1654_v26 = vpop.f32.mrf.mxu1 }
 0x11b   :  { %v1655_v34 = vadd.f32 %v1654_v26, %v1579_v49 }
 0x11c   :  { %v1734_v35 = vpop.f32.mrf.mxu0  ;;  %v1656_v56 = vpop.f32.mrf.mxu1 }
 0x11d   :  { %2154 = vst [vmem:[%s2746_s1 + $0x20] sm:$0xff] %v1655_v34  ;;  %v1657_v42 = vadd.f32 %v1656_v56, %v1581_v54 }
 0x11e   :  { %v1736_v47 = vpop.f32.mrf.mxu0 }
 0x11f   :  { %2155 = vst [vmem:[%s2746_s1 + $0x28] sm:$0xff] %v1657_v42 }
 0x120   :  { %v1826_v57 = vpop.f32.mrf.mxu1 }
 0x121   :  { %v1827_v58 = vadd.f32 %v1826_v57, %v1734_v35 }
 0x122   :  { %v1907_v59 = vpop.f32.mrf.mxu0  ;;  %v1828_v11 = vpop.f32.mrf.mxu1 }
 0x123   :  { %v1908_v62 = vadd.f32 %v1907_v59, %v1827_v58  ;;  %v1829_v63 = vadd.f32 %v1828_v11, %v1736_v47 }
 0x124   :  { %v1909_v0 = vpop.f32.mrf.mxu0 }
 0x125   :  { %v1910_v3 = vadd.f32 %v1909_v0, %v1829_v63 }
 0x126   :  { %v1985_v4 = vpop.f32.mrf.mxu1 }
 0x127   :  { %v1986_v60 = vadd.f32 %v1985_v4, %v1908_v62 }
 0x128   :  { %v2069_v5 = vpop.f32.mrf.mxu0  ;;  %v1987_v1 = vpop.f32.mrf.mxu1 }
 0x129   :  { %v2070_v10 = vadd.f32 %v2069_v5, %v1986_v60  ;;  %v1988_v15 = vadd.f32 %v1987_v1, %v1910_v3 }
 0x12a   :  { %v2071_v16 = vpop.f32.mrf.mxu0 }
 0x12b   :  { %v2072_v27 = vadd.f32 %v2071_v16, %v1988_v15  ;;  %v2145_v17 = vpop.f32.mrf.mxu1 }
 0x12c   :  { %v2146_v37 = vadd.f32 %v2145_v17, %v2070_v10 }
 0x12d   :  { %v2147_v38 = vpop.f32.mrf.mxu1 }
 0x12e   :  { %2156 = vst [vmem:[%s2746_s1 + $0x30] sm:$0xff] %v2146_v37  ;;  %v2148_v44 = vadd.f32 %v2147_v38, %v2072_v27 }
 0x130   :  { %2157 = vst [vmem:[%s2746_s1 + $0x38] sm:$0xff] %v2148_v44 }
 0x131   :  { %2162 = vsyncpa [#allocation3], 1 }

</bundles_post_ra>
